<compile_context>
chip_gen: v6e
topology: v6e:2x2x1
jax: 0.10.0
libtpu: 0.0.40
codegen_flags: <defaults>
</compile_context>

<pallas_src>
import functools

import jax
import jax.numpy as jnp
from jax.experimental import pallas as pl
from jax.experimental.pallas import tpu as pltpu

# ---------------- problem sizes (small, consistent with the module) ----------
NUM_RAW = 2
NUM_ANGLE = 3
Q_DIM = NUM_RAW + 2 * NUM_ANGLE          # 8
DQ_DIM = NUM_RAW + NUM_ANGLE             # 5
IN_DIM = Q_DIM + DQ_DIM                  # 13  (input feature dim, no control)
ODE_OUT_DIM = 2 * DQ_DIM                 # 10  (ODENet output: dr|dth|ddq)
HIDDEN = 32
BATCH = 256

# lane-dense padded widths (128-lane vregs, unmasked input loads)
F_PAD = 128                              # features (inputs / ODE output)
H_PAD = 128                              # hidden
assert F_PAD == 128, "roll-based recombine assumes a full 128-lane width"


def baseline_kernel(x_ref, w1_ref, w2_ref, b2_ref, o_ref):
    # x lanes: [0,2)=r  [2,5)=x1  [5,8)=x2  [8,13)=dq  (13)=1.0 bias  rest=0
    x = x_ref[...].astype(jnp.float32)                        # (TB, F_PAD)

    # ---- ODENet: Linear(+folded b1) -> tanh -> Linear(+b2); f32 MXU acc ----
    h = jnp.tanh(jnp.dot(x, w1_ref[...], preferred_element_type=jnp.float32))
    dq_ddq = (
        jnp.dot(h, w2_ref[...], preferred_element_type=jnp.float32) + b2_ref[...]
    )  # lanes: [0,2)=dr  [2,5)=dth  [5,10)=ddq  rest=0

    # ---- recombine: out = [dr | -x2*dth | x1*dth | ddq] -----------------
    lane = jax.lax.broadcasted_iota(jnp.int32, x.shape, 1)
    # y lanes: [2,5)=x1*dth, [5,10)=ddq  -> one roll(+3) covers out lanes [5,13)
    y = dq_ddq * jnp.where(
        (lane >= NUM_RAW) & (lane < NUM_RAW + NUM_ANGLE), x, 1.0
    )
    y_p3 = pltpu.roll(y, NUM_ANGLE, 1)               # x1*dth -> [5,8), ddq -> [8,13)
    x_m3 = pltpu.roll(x, F_PAD - NUM_ANGLE, 1)       # x2 -> lanes [2,5)

    out = jnp.where(
        lane < NUM_RAW, dq_ddq,                                   # dr
        jnp.where(lane < NUM_RAW + NUM_ANGLE, -x_m3 * dq_ddq,     # dx1 = -x2*dth
                  y_p3),                                          # dx2 | ddq
    )
    # true-width (13-lane) store: one masked vst per tile, no post-kernel slice
    o_ref[...] = out[:, :IN_DIM].astype(o_ref.dtype)


def pad_params(w1, b1, w2, b2):
    """One-time (init-time) lane/sublane-dense padding of the ODENet params.

    b1 is folded into w1: the kernel input carries a constant 1.0 at lane
    IN_DIM, and w1 row IN_DIM holds b1.
    """
    w1b = jnp.zeros((F_PAD, H_PAD), w1.dtype)
    w1b = w1b.at[:IN_DIM, :HIDDEN].set(w1)
    w1b = w1b.at[IN_DIM, :HIDDEN].set(b1.reshape(-1))
    w2p = jnp.zeros((H_PAD, F_PAD), w2.dtype).at[:HIDDEN, :ODE_OUT_DIM].set(w2)
    b2p = jnp.zeros((1, F_PAD), b2.dtype).at[:, :ODE_OUT_DIM].set(b2.reshape(1, -1))
    return w1b, w2p, b2p


@functools.partial(jax.jit, static_argnames=("tb",))
def baseline_forward(x, w1b_p, w2_p, b2_p, *, tb=None):
    bs = x.shape[0]
    if tb is None:
        # Single grid step by default: the kernel is overhead/DMA bound, so
        # extra grid steps only pay per-step cost on single-TC v5e/v6e.
        tb = max(8, pl.cdiv(bs, 8) * 8)
    bs_pad = pl.cdiv(bs, tb) * tb

    # Fused per-call pad: append the 1.0 bias lane, then zero-pad to the
    # lane-dense (bs_pad, F_PAD) slab (padding is exact zeros -> numerics
    # unchanged; required for roll wrap-around correctness).
    x_b = jnp.pad(x, ((0, 0), (0, 1)), constant_values=1.0)
    x_p = jnp.pad(x_b, ((0, bs_pad - bs), (0, F_PAD - IN_DIM - 1)))

    itemsize = jnp.dtype(x.dtype).itemsize
    cost = pl.CostEstimate(
        flops=2 * bs_pad * (F_PAD * H_PAD + H_PAD * F_PAD),
        transcendentals=bs_pad * H_PAD,
        bytes_accessed=(
            x_p.size + w1b_p.size + w2_p.size + b2_p.size + bs_pad * IN_DIM
        ) * itemsize,
    )

    grid_spec = pltpu.PrefetchScalarGridSpec(
        num_scalar_prefetch=0,
        grid=(bs_pad // tb,),
        in_specs=[
            pl.BlockSpec((tb, F_PAD), lambda i: (i, 0)),      # x tile per step
            pl.BlockSpec((F_PAD, H_PAD), lambda i: (0, 0)),   # weights resident
            pl.BlockSpec((H_PAD, F_PAD), lambda i: (0, 0)),
            pl.BlockSpec((1, F_PAD), lambda i: (0, 0)),
        ],
        out_specs=pl.BlockSpec((tb, IN_DIM), lambda i: (i, 0)),
    )

    out = pl.pallas_call(
        baseline_kernel,
        out_shape=jax.ShapeDtypeStruct((bs_pad, IN_DIM), x.dtype),
        grid_spec=grid_spec,
        compiler_params=pltpu.CompilerParams(
            dimension_semantics=("parallel",)      # shards batch if tb < bs_pad
        ),
        cost_estimate=cost,
    )(x_p, w1b_p, w2_p, b2_p)

    return out if bs_pad == bs else out[:bs]


def baseline_reference(x, w1, b1, w2, b2):
    """Pure-JAX reference mirroring the PyTorch forward (no-control branch)."""
    h = jnp.tanh(x @ w1 + b1)
    dq_ddq = h @ w2 + b2
    dr = dq_ddq[:, :NUM_RAW]
    dth = dq_ddq[:, NUM_RAW:NUM_RAW + NUM_ANGLE]
    ddq = dq_ddq[:, NUM_RAW + NUM_ANGLE:]
    x1 = x[:, NUM_RAW:NUM_RAW + NUM_ANGLE]
    x2 = x[:, NUM_RAW + NUM_ANGLE:Q_DIM]
    dx1 = -x2 * dth
    dx2 = x1 * dth
    return jnp.concatenate([dr, dx1, dx2, ddq], axis=1)


if __name__ == "__main__":
    key = jax.random.PRNGKey(0)
    k_x, k_w1, k_b1, k_w2, k_b2 = jax.random.split(key, 5)

    x = jax.random.normal(k_x, (BATCH, IN_DIM), dtype=jnp.float32)
    # deterministic ODENet (MLP) parameters
    w1 = jax.random.normal(k_w1, (IN_DIM, HIDDEN), dtype=jnp.float32) * 0.1
    b1 = jax.random.normal(k_b1, (1, HIDDEN), dtype=jnp.float32) * 0.1
    w2 = jax.random.normal(k_w2, (HIDDEN, ODE_OUT_DIM), dtype=jnp.float32) * 0.1
    b2 = jax.random.normal(k_b2, (1, ODE_OUT_DIM), dtype=jnp.float32) * 0.1

    # One-time param padding (init-time, not on the per-call path).
    w1b_p, w2_p, b2_p = pad_params(w1, b1, w2, b2)

    out = jax.block_until_ready(baseline_forward(x, w1b_p, w2_p, b2_p))

    ref = baseline_reference(x, w1, b1, w2, b2)
    assert out.shape == (BATCH, IN_DIM), out.shape
    assert jnp.allclose(out, ref, atol=1e-5, rtol=1e-5), "mismatch vs reference"

    print("KERNEL_OK")
</pallas_src>

<mosaic_0001>
module attributes {stable_mosaic.version = 11 : i64} {
  func.func @baseline_kernel(%arg0: i32, %arg1: memref<256x128xf32, #tpu.memory_space<vmem>>, %arg2: memref<128x128xf32, #tpu.memory_space<vmem>>, %arg3: memref<128x128xf32, #tpu.memory_space<vmem>>, %arg4: memref<1x128xf32, #tpu.memory_space<vmem>>, %arg5: memref<256x13xf32, #tpu.memory_space<vmem>>) attributes {dimension_semantics = [#tpu.dimension_semantics<parallel>], iteration_bounds = array<i64: 1>, scalar_prefetch = 0 : i64, scratch_operands = 0 : i64, tpu.core_type = #tpu.core_type<tc>, window_params = [{transform_indices = @transform_0, window_bounds = array<i64: 256, 128>}, {pipeline_mode = #tpu.pipeline_mode<synchronous>, transform_indices = @transform_1, window_bounds = array<i64: 128, 128>}, {pipeline_mode = #tpu.pipeline_mode<synchronous>, transform_indices = @transform_2, window_bounds = array<i64: 128, 128>}, {pipeline_mode = #tpu.pipeline_mode<synchronous>, transform_indices = @transform_3, window_bounds = array<i64: 1, 128>}, {transform_indices = @transform_4, window_bounds = array<i64: 256, 13>}]} {
    %c0 = arith.constant 0 : index
    %c0_0 = arith.constant 0 : index
    %0 = vector.load %arg1[%c0, %c0_0] : memref<256x128xf32, #tpu.memory_space<vmem>>, vector<256x128xf32>
    %c0_1 = arith.constant 0 : index
    %c0_2 = arith.constant 0 : index
    %1 = vector.load %arg2[%c0_1, %c0_2] : memref<128x128xf32, #tpu.memory_space<vmem>>, vector<128x128xf32>
    %cst = arith.constant dense<0.000000e+00> : vector<256x128xf32>
    %2 = tpu.matmul %0, %1, %cst {dimension_numbers = #tpu.dot_dimension_numbers<[1], [0], [0], [1], [0, 0, 1, 1], [], []>} : vector<256x128xf32>, vector<128x128xf32>, vector<256x128xf32> -> vector<256x128xf32>
    %3 = math.tanh %2 : vector<256x128xf32>
    %c0_3 = arith.constant 0 : index
    %c0_4 = arith.constant 0 : index
    %4 = vector.load %arg3[%c0_3, %c0_4] : memref<128x128xf32, #tpu.memory_space<vmem>>, vector<128x128xf32>
    %cst_5 = arith.constant dense<0.000000e+00> : vector<256x128xf32>
    %5 = tpu.matmul %3, %4, %cst_5 {dimension_numbers = #tpu.dot_dimension_numbers<[1], [0], [0], [1], [0, 0, 1, 1], [], []>} : vector<256x128xf32>, vector<128x128xf32>, vector<256x128xf32> -> vector<256x128xf32>
    %c0_6 = arith.constant 0 : index
    %c0_7 = arith.constant 0 : index
    %6 = vector.load %arg4[%c0_6, %c0_7] : memref<1x128xf32, #tpu.memory_space<vmem>>, vector<1x128xf32>
    %7 = vector.broadcast %6 : vector<1x128xf32> to vector<256x128xf32>
    %8 = arith.addf %5, %7 : vector<256x128xf32>
    %9 = tpu.iota {dimensions = array<i32: 1>} : vector<256x128xi32>
    %c2_i32 = arith.constant 2 : i32
    %10 = vector.broadcast %c2_i32 : i32 to vector<256x128xi32>
    %11 = arith.cmpi sge, %9, %10 : vector<256x128xi32>
    %c5_i32 = arith.constant 5 : i32
    %12 = vector.broadcast %c5_i32 : i32 to vector<256x128xi32>
    %13 = arith.cmpi slt, %9, %12 : vector<256x128xi32>
    %14 = arith.andi %11, %13 : vector<256x128xi1>
    %cst_8 = arith.constant 1.000000e+00 : f32
    %15 = vector.broadcast %cst_8 : f32 to vector<256x128xf32>
    %16 = arith.select %14, %0, %15 : vector<256x128xi1>, vector<256x128xf32>
    %17 = arith.mulf %8, %16 : vector<256x128xf32>
    %c3_i32 = arith.constant 3 : i32
    %18 = tpu.dynamic_rotate %17 by %c3_i32 dim 1 : vector<256x128xf32>, i32 -> vector<256x128xf32>
    %c125_i32 = arith.constant 125 : i32
    %19 = tpu.dynamic_rotate %0 by %c125_i32 dim 1 : vector<256x128xf32>, i32 -> vector<256x128xf32>
    %c2_i32_9 = arith.constant 2 : i32
    %20 = vector.broadcast %c2_i32_9 : i32 to vector<256x128xi32>
    %21 = arith.cmpi slt, %9, %20 : vector<256x128xi32>
    %c5_i32_10 = arith.constant 5 : i32
    %22 = vector.broadcast %c5_i32_10 : i32 to vector<256x128xi32>
    %23 = arith.cmpi slt, %9, %22 : vector<256x128xi32>
    %cst_11 = arith.constant 0.000000e+00 : f32
    %24 = vector.broadcast %cst_11 : f32 to vector<256x128xf32>
    %25 = arith.subf %24, %19 : vector<256x128xf32>
    %26 = arith.mulf %25, %8 : vector<256x128xf32>
    %27 = arith.select %23, %26, %18 : vector<256x128xi1>, vector<256x128xf32>
    %28 = arith.select %21, %8, %27 : vector<256x128xi1>, vector<256x128xf32>
    %29 = vector.extract_strided_slice %28 {offsets = [0, 0], sizes = [256, 13], strides = [1, 1]} : vector<256x128xf32> to vector<256x13xf32>
    %c0_12 = arith.constant 0 : index
    %c0_13 = arith.constant 0 : index
    %30 = vector.load %arg5[%c0_12, %c0_13] : memref<256x13xf32, #tpu.memory_space<vmem>>, vector<256x13xf32>
    tpu.vector_store %arg5[%c0_12, %c0_13], %29 {strides = array<i32>} : memref<256x13xf32, #tpu.memory_space<vmem>>, vector<256x13xf32>,
    return
  }
  func.func @transform_0(%arg0: i32) -> (i32, i32) {
    %c0_i32 = arith.constant 0 : i32
    %c0_i32_0 = arith.constant 0 : i32
    return %arg0, %c0_i32 : i32, i32
  }
  func.func @transform_1(%arg0: i32) -> (i32, i32) {
    %c0_i32 = arith.constant 0 : i32
    %c0_i32_0 = arith.constant 0 : i32
    %c0_i32_1 = arith.constant 0 : i32
    return %c0_i32, %c0_i32_0 : i32, i32
  }
  func.func @transform_2(%arg0: i32) -> (i32, i32) {
    %c0_i32 = arith.constant 0 : i32
    %c0_i32_0 = arith.constant 0 : i32
    %c0_i32_1 = arith.constant 0 : i32
    return %c0_i32, %c0_i32_0 : i32, i32
  }
  func.func @transform_3(%arg0: i32) -> (i32, i32) {
    %c0_i32 = arith.constant 0 : i32
    %c0_i32_0 = arith.constant 0 : i32
    %c0_i32_1 = arith.constant 0 : i32
    return %c0_i32, %c0_i32_0 : i32, i32
  }
  func.func @transform_4(%arg0: i32) -> (i32, i32) {
    %c0_i32 = arith.constant 0 : i32
    %c0_i32_0 = arith.constant 0 : i32
    return %arg0, %c0_i32 : i32, i32
  }
}

</mosaic_0001>

<bundles_post_ra>
// kernel: baseline_forward.1
= control target key start
LH: loop header
LB: loop body
LE: loop exit
PB: predicated region body
PF: predicated region fallthrough
CT: control target
= control target key end

     0   :  { %s1256_s9 = smov 125   ;;  %vm896_vm4 = vcmask 105472   ;;  %s2317_s1 = inlined_call_operand.vmem [shape: f32[128,128], index: 1, kind: input, shape index: {}]   ;;  %s2318_s0 = inlined_call_operand.vmem [shape: f32[256,128], index: 0, kind: input, shape index: {}]   ;;  %s2319_s2 = inlined_call_operand.vmem [shape: f32[128,128], index: 2, kind: input, shape index: {}]   ;;  %s2320_s3 = inlined_call_operand.vmem [shape: f32[1,128], index: 3, kind: input, shape index: {}]   ;;  %s2321_s4 = inlined_call_operand.vmem [shape: f32[256,13], index: 4, kind: output, shape index: {}]  }
   0x1   :  { %v64_v0 = vld [vmem:[%s2317_s1 + $0x78] sm:$0xff]  ;;  %v63_v1 = vld [vmem:[%s2317_s1 + $0x70] sm:$0xff]  ;;  %v62_v2 = vld [vmem:[%s2317_s1 + $0x68] sm:$0xff] }
   0x2   :  { %1030 = vmatprep.subr.mxu0 %v64_v0  ;;  %v61_v3 = vld [vmem:[%s2317_s1 + $0x60] sm:$0xff]  ;;  %v60_v5 = vld [vmem:[%s2317_s1 + $0x58] sm:$0xff]  ;;  %v59_v6 = vld [vmem:[%s2317_s1 + $0x50] sm:$0xff] }
   0x3   :  { %1031 = vmatpush3.msra.mxu0 %v64_v0  ;;  %v1298_v4 = vld [vmem:[%s2318_s0] sm:$0xff]  ;;  %v58_v7 = vld [vmem:[%s2317_s1 + $0x48] sm:$0xff]  ;;  %v56_v9 = vld [vmem:[%s2317_s1 + $0x38] sm:$0xff] }
   0x4   :  { %1032 = vmatprep.subr.mxu0 %v63_v1  ;;  %1062 = vmatprep.mubr.f32.mxu0 %v1298_v4  ;;  %v57_v8 = vld [vmem:[%s2317_s1 + $0x40] sm:$0xff]  ;;  %v55_v10 = vld [vmem:[%s2317_s1 + $0x30] sm:$0xff]  ;;  %v337_v11 = vld [vmem:[%s2319_s2 + $0x78] sm:$0xff] }
   0x5   :  { %1033 = vmatpush3.msra.mxu0 %v63_v1  ;;  %v336_v12 = vld [vmem:[%s2319_s2 + $0x70] sm:$0xff]  ;;  %1110 = vmatprep.subr.mxu1 %v337_v11  ;;  %v54_v13 = vld [vmem:[%s2317_s1 + $0x28] sm:$0xff]  ;;  %v53_v15 = vld [vmem:[%s2317_s1 + $0x20] sm:$0xff] }
   0x6   :  { %1034 = vmatprep.subr.mxu0 %v62_v2  ;;  %1111 = vmatpush3.msra.mxu1 %v337_v11  ;;  %v335_v14 = vld [vmem:[%s2319_s2 + $0x68] sm:$0xff]  ;;  %v334_v16 = vld [vmem:[%s2319_s2 + $0x60] sm:$0xff]  ;;  %v52_v17 = vld [vmem:[%s2317_s1 + $0x18] sm:$0xff] }
   0x7   :  { %1035 = vmatpush3.msra.mxu0 %v62_v2  ;;  %1112 = vmatprep.subr.mxu1 %v336_v12  ;;  %v333_v18 = vld [vmem:[%s2319_s2 + $0x58] sm:$0xff]  ;;  %v51_v19 = vld [vmem:[%s2317_s1 + $0x10] sm:$0xff]  ;;  %v50_v21 = vld [vmem:[%s2317_s1 + $0x8] sm:$0xff] }
   0x8   :  { %1036 = vmatprep.subr.mxu0 %v61_v3  ;;  %1113 = vmatpush3.msra.mxu1 %v336_v12  ;;  %v332_v20 = vld [vmem:[%s2319_s2 + $0x50] sm:$0xff]  ;;  %v331_v22 = vld [vmem:[%s2319_s2 + $0x48] sm:$0xff]  ;;  %v49_v23 = vld [vmem:[%s2317_s1] sm:$0xff] }
   0x9   :  { %1037 = vmatpush3.msra.mxu0 %v61_v3  ;;  %1114 = vmatprep.subr.mxu1 %v335_v14  ;;  %v1361_v24 = vld [vmem:[%s2318_s0 + $0x8] sm:$0xff]  ;;  %v1366_v25 = vld [vmem:[%s2318_s0 + $0x10] sm:$0xff]  ;;  %v1373_v26 = vld [vmem:[%s2318_s0 + $0x18] sm:$0xff] }
   0xa   :  { %1038 = vmatprep.subr.mxu0 %v60_v5  ;;  %1115 = vmatpush3.msra.mxu1 %v335_v14  ;;  %v1378_v27 = vld [vmem:[%s2318_s0 + $0x20] sm:$0xff]  ;;  %v1385_v28 = vld [vmem:[%s2318_s0 + $0x28] sm:$0xff]  ;;  %v1390_v29 = vld [vmem:[%s2318_s0 + $0x30] sm:$0xff] }
   0xb   :  { %1039 = vmatpush3.msra.mxu0 %v60_v5  ;;  %1116 = vmatprep.subr.mxu1 %v334_v16  ;;  %v1397_v30 = vld [vmem:[%s2318_s0 + $0x38] sm:$0xff]  ;;  %v1402_v31 = vld [vmem:[%s2318_s0 + $0x40] sm:$0xff]  ;;  %v1409_v32 = vld [vmem:[%s2318_s0 + $0x48] sm:$0xff] }
   0xc   :  { %1040 = vmatprep.subr.mxu0 %v59_v6  ;;  %1117 = vmatpush3.msra.mxu1 %v334_v16  ;;  %v1414_v33 = vld [vmem:[%s2318_s0 + $0x50] sm:$0xff]  ;;  %v1421_v34 = vld [vmem:[%s2318_s0 + $0x58] sm:$0xff]  ;;  %v1426_v35 = vld [vmem:[%s2318_s0 + $0x60] sm:$0xff] }
   0xd   :  { %1041 = vmatpush3.msra.mxu0 %v59_v6  ;;  %1118 = vmatprep.subr.mxu1 %v333_v18  ;;  %v1433_v36 = vld [vmem:[%s2318_s0 + $0x68] sm:$0xff]  ;;  %v1438_v37 = vld [vmem:[%s2318_s0 + $0x70] sm:$0xff]  ;;  %v1445_v38 = vld [vmem:[%s2318_s0 + $0x78] sm:$0xff] }
   0xe   :  { %1042 = vmatprep.subr.mxu0 %v58_v7  ;;  %1119 = vmatpush3.msra.mxu1 %v333_v18  ;;  %v1450_v39 = vld [vmem:[%s2318_s0 + $0x80] sm:$0xff]  ;;  %v1457_v40 = vld [vmem:[%s2318_s0 + $0x88] sm:$0xff]  ;;  %v1462_v41 = vld [vmem:[%s2318_s0 + $0x90] sm:$0xff] }
   0xf   :  { %1043 = vmatpush3.msra.mxu0 %v58_v7  ;;  %1120 = vmatprep.subr.mxu1 %v332_v20  ;;  %v1469_v42 = vld [vmem:[%s2318_s0 + $0x98] sm:$0xff]  ;;  %v1474_v43 = vld [vmem:[%s2318_s0 + $0xa0] sm:$0xff]  ;;  %v1481_v44 = vld [vmem:[%s2318_s0 + $0xa8] sm:$0xff] }
  0x10   :  { %1044 = vmatprep.subr.mxu0 %v57_v8  ;;  %1121 = vmatpush3.msra.mxu1 %v332_v20  ;;  %v1486_v45 = vld [vmem:[%s2318_s0 + $0xb0] sm:$0xff]  ;;  %v1493_v46 = vld [vmem:[%s2318_s0 + $0xb8] sm:$0xff]  ;;  %v1498_v47 = vld [vmem:[%s2318_s0 + $0xc0] sm:$0xff] }
  0x11   :  { %1045 = vmatpush3.msra.mxu0 %v57_v8  ;;  %1122 = vmatprep.subr.mxu1 %v331_v22  ;;  %v1505_v48 = vld [vmem:[%s2318_s0 + $0xc8] sm:$0xff]  ;;  %v1510_v49 = vld [vmem:[%s2318_s0 + $0xd0] sm:$0xff]  ;;  %v1517_v50 = vld [vmem:[%s2318_s0 + $0xd8] sm:$0xff] }
  0x12   :  { %1046 = vmatprep.subr.mxu0 %v56_v9  ;;  %1123 = vmatpush3.msra.mxu1 %v331_v22  ;;  %v1522_v51 = vld [vmem:[%s2318_s0 + $0xe0] sm:$0xff]  ;;  %v1529_v52 = vld [vmem:[%s2318_s0 + $0xe8] sm:$0xff]  ;;  %v1534_v53 = vld [vmem:[%s2318_s0 + $0xf0] sm:$0xff] }
  0x13   :  { %1047 = vmatpush3.msra.mxu0 %v56_v9  ;;  %v1541_v54 = vld [vmem:[%s2318_s0 + $0xf8] sm:$0xff]  ;;  %v330_v55 = vld [vmem:[%s2319_s2 + $0x40] sm:$0xff]  ;;  %v328_v57 = vld [vmem:[%s2319_s2 + $0x30] sm:$0xff]  ;;  %705 = vrot.lane.b32.xlu1 %v1361_v24, %s1256_s9 }
  0x14   :  { %1048 = vmatprep.subr.mxu0 %v55_v10  ;;  %1124 = vmatprep.subr.mxu1 %v330_v55  ;;  %v329_v56 = vld [vmem:[%s2319_s2 + $0x38] sm:$0xff]  ;;  %v327_v58 = vld [vmem:[%s2319_s2 + $0x28] sm:$0xff]  ;;  %v326_v59 = vld [vmem:[%s2319_s2 + $0x20] sm:$0xff] }
  0x15   :  { %1049 = vmatpush3.msra.mxu0 %v55_v10  ;;  %1125 = vmatpush3.msra.mxu1 %v330_v55  ;;  %v325_v60 = vld [vmem:[%s2319_s2 + $0x18] sm:$0xff]  ;;  %v324_v61 = vld [vmem:[%s2319_s2 + $0x10] sm:$0xff]  ;;  %v323_v62 = vld [vmem:[%s2319_s2 + $0x8] sm:$0xff] }
  0x16   :  { %1050 = vmatprep.subr.mxu0 %v54_v13  ;;  %1126 = vmatprep.subr.mxu1 %v329_v56  ;;  %v322_v63 = vld [vmem:[%s2319_s2] sm:$0xff] }
  0x17   :  { %1051 = vmatpush3.msra.mxu0 %v54_v13  ;;  %1127 = vmatpush3.msra.mxu1 %v329_v56 }
  0x18   :  { %1052 = vmatprep.subr.mxu0 %v53_v15  ;;  %1128 = vmatprep.subr.mxu1 %v328_v57 }
  0x19   :  { %1053 = vmatpush3.msra.mxu0 %v53_v15  ;;  %1129 = vmatpush3.msra.mxu1 %v328_v57 }
  0x1a   :  { %1054 = vmatprep.subr.mxu0 %v52_v17  ;;  %1130 = vmatprep.subr.mxu1 %v327_v58 }
  0x1b   :  { %1055 = vmatpush3.msra.mxu0 %v52_v17  ;;  %1131 = vmatpush3.msra.mxu1 %v327_v58 }
  0x1c   :  { %1056 = vmatprep.subr.mxu0 %v51_v19  ;;  %1132 = vmatprep.subr.mxu1 %v326_v59 }
  0x1d   :  { %1057 = vmatpush3.msra.mxu0 %v51_v19  ;;  %1133 = vmatpush3.msra.mxu1 %v326_v59 }
  0x1e   :  { %1058 = vmatprep.subr.mxu0 %v50_v21  ;;  %1134 = vmatprep.subr.mxu1 %v325_v60 }
  0x1f   :  { %1059 = vmatpush3.msra.mxu0 %v50_v21  ;;  %1135 = vmatpush3.msra.mxu1 %v325_v60 }
  0x20   :  { %1060 = vmatprep.subr.mxu0 %v49_v23  ;;  %1136 = vmatprep.subr.mxu1 %v324_v61 }
  0x21   :  { %1061 = vmatpush3.msra.mxu0 %v49_v23  ;;  %1137 = vmatpush3.msra.mxu1 %v324_v61 }
  0x22   :  { %1063 = vmatmul.mubr.f32.vlgmr.msra.gmra.mxu0 %v1361_v24  ;;  %1138 = vmatprep.subr.mxu1 %v323_v62 }
  0x23   :  { %1065 = vmatprep.mubr.f32.mxu0 %v1366_v25  ;;  %1139 = vmatpush3.msra.mxu1 %v323_v62 }
  0x24   :  { %1140 = vmatprep.subr.mxu1 %v322_v63  ;;  %703 = vrot.lane.b32.xlu0 %v1298_v4, %s1256_s9 }
  0x25   :  { %1141 = vmatpush3.msra.mxu1 %v322_v63  ;;  %709 = vrot.lane.b32.xlu1 %v1373_v26, %s1256_s9 }
  0x26   :  { %1066 = vmatmul.mubr.f32.gmra.mxu0 %v1373_v26 }
  0x27   :  { %1068 = vmatprep.mubr.f32.mxu0 %v1378_v27 }
  0x28   :  { %707 = vrot.lane.b32.xlu0 %v1366_v25, %s1256_s9 }
  0x29   :  { %713 = vrot.lane.b32.xlu1 %v1385_v28, %s1256_s9 }
  0x2a   :  { %1069 = vmatmul.mubr.f32.gmra.mxu0 %v1385_v28 }
  0x2b   :  { %1071 = vmatprep.mubr.f32.mxu0 %v1390_v29 }
  0x2c   :  { %711 = vrot.lane.b32.xlu0 %v1378_v27, %s1256_s9 }
  0x2d   :  { %717 = vrot.lane.b32.xlu1 %v1397_v30, %s1256_s9 }
  0x2e   :  { %1072 = vmatmul.mubr.f32.gmra.mxu0 %v1397_v30 }
  0x2f   :  { %1074 = vmatprep.mubr.f32.mxu0 %v1402_v31 }
  0x30   :  { %715 = vrot.lane.b32.xlu0 %v1390_v29, %s1256_s9 }
  0x31   :  { %721 = vrot.lane.b32.xlu1 %v1409_v32, %s1256_s9 }
  0x32   :  { %1075 = vmatmul.mubr.f32.gmra.mxu0 %v1409_v32 }
  0x33   :  { %1077 = vmatprep.mubr.f32.mxu0 %v1414_v33 }
  0x34   :  { %719 = vrot.lane.b32.xlu0 %v1402_v31, %s1256_s9 }
  0x35   :  { %725 = vrot.lane.b32.xlu1 %v1421_v34, %s1256_s9 }
  0x36   :  { %1078 = vmatmul.mubr.f32.gmra.mxu0 %v1421_v34 }
  0x37   :  { %1080 = vmatprep.mubr.f32.mxu0 %v1426_v35 }
  0x38   :  { %723 = vrot.lane.b32.xlu0 %v1414_v33, %s1256_s9 }
  0x39   :  { %729 = vrot.lane.b32.xlu1 %v1433_v36, %s1256_s9 }
  0x3a   :  { %1081 = vmatmul.mubr.f32.gmra.mxu0 %v1433_v36 }
  0x3b   :  { %1083 = vmatprep.mubr.f32.mxu0 %v1438_v37 }
  0x3c   :  { %727 = vrot.lane.b32.xlu0 %v1426_v35, %s1256_s9 }
  0x3d   :  { %733 = vrot.lane.b32.xlu1 %v1445_v38, %s1256_s9 }
  0x3e   :  { %1084 = vmatmul.mubr.f32.gmra.mxu0 %v1445_v38 }
  0x3f   :  { %1086 = vmatprep.mubr.f32.mxu0 %v1450_v39 }
  0x40   :  { %731 = vrot.lane.b32.xlu0 %v1438_v37, %s1256_s9 }
  0x41   :  { %737 = vrot.lane.b32.xlu1 %v1457_v40, %s1256_s9 }
  0x42   :  { %1087 = vmatmul.mubr.f32.gmra.mxu0 %v1457_v40 }
  0x43   :  { %1089 = vmatprep.mubr.f32.mxu0 %v1462_v41 }
  0x44   :  { %735 = vrot.lane.b32.xlu0 %v1450_v39, %s1256_s9 }
  0x45   :  { %741 = vrot.lane.b32.xlu1 %v1469_v42, %s1256_s9 }
  0x46   :  { %1090 = vmatmul.mubr.f32.gmra.mxu0 %v1469_v42 }
  0x47   :  { %1092 = vmatprep.mubr.f32.mxu0 %v1474_v43 }
  0x48   :  { %739 = vrot.lane.b32.xlu0 %v1462_v41, %s1256_s9 }
  0x49   :  { %745 = vrot.lane.b32.xlu1 %v1481_v44, %s1256_s9 }
  0x4a   :  { %1093 = vmatmul.mubr.f32.gmra.mxu0 %v1481_v44 }
  0x4b   :  { %1095 = vmatprep.mubr.f32.mxu0 %v1486_v45 }
  0x4c   :  { %743 = vrot.lane.b32.xlu0 %v1474_v43, %s1256_s9 }
  0x4d   :  { %749 = vrot.lane.b32.xlu1 %v1493_v46, %s1256_s9 }
  0x4e   :  { %1096 = vmatmul.mubr.f32.gmra.mxu0 %v1493_v46 }
  0x4f   :  { %1098 = vmatprep.mubr.f32.mxu0 %v1498_v47 }
  0x50   :  { %747 = vrot.lane.b32.xlu0 %v1486_v45, %s1256_s9 }
  0x51   :  { %753 = vrot.lane.b32.xlu1 %v1505_v48, %s1256_s9 }
  0x52   :  { %1099 = vmatmul.mubr.f32.gmra.mxu0 %v1505_v48 }
  0x53   :  { %1101 = vmatprep.mubr.f32.mxu0 %v1510_v49 }
  0x54   :  { %751 = vrot.lane.b32.xlu0 %v1498_v47, %s1256_s9 }
  0x55   :  { %757 = vrot.lane.b32.xlu1 %v1517_v50, %s1256_s9 }
  0x56   :  { %1102 = vmatmul.mubr.f32.gmra.mxu0 %v1517_v50 }
  0x57   :  { %1104 = vmatprep.mubr.f32.mxu0 %v1522_v51 }
  0x58   :  { %755 = vrot.lane.b32.xlu0 %v1510_v49, %s1256_s9 }
  0x59   :  { %761 = vrot.lane.b32.xlu1 %v1529_v52, %s1256_s9 }
  0x5a   :  { %1105 = vmatmul.mubr.f32.gmra.mxu0 %v1529_v52 }
  0x5b   :  { %1107 = vmatprep.mubr.f32.mxu0 %v1534_v53 }
  0x5c   :  { %759 = vrot.lane.b32.xlu0 %v1522_v51, %s1256_s9 }
  0x5e   :  { %1108 = vmatmul.mubr.f32.gmra.mxu0 %v1541_v54 }
  0xe2   :  { %v1064_v0 = vpop.f32.mrf.mxu0 }
  0xe4   :  { %v131_v1 = vpop.f32.mrf.mxu0 }
  0xe5   :  { %1192 = vtanh.f32 %v131_v1 }
  0xe6   :  { %1194 = vtanh.f32 %v1064_v0  ;;  %v1067_v2 = vpop.f32.mrf.mxu0 }
  0xe8   :  { %v141_v3 = vpop.f32.mrf.mxu0 }
  0xe9   :  { %1196 = vtanh.f32 %v141_v3 }
  0xea   :  { %1198 = vtanh.f32 %v1067_v2  ;;  %v1070_v5 = vpop.f32.mrf.mxu0 }
  0xeb   :  { %1200 = vtanh.f32 %v1070_v5 }
  0xec   :  { %v151_v6 = vpop.f32.mrf.mxu0 }
  0xed   :  { %1202 = vtanh.f32 %v151_v6 }
  0xee   :  { %v1073_v7 = vpop.f32.mrf.mxu0 }
  0xef   :  { %1204 = vtanh.f32 %v1073_v7 }
  0xf0   :  { %v161_v8 = vpop.f32.mrf.mxu0 }
  0xf1   :  { %1206 = vtanh.f32 %v161_v8 }
  0xf2   :  { %v1193_v9 = vpop.eup %1192  ;;  %v1076_v10 = vpop.f32.mrf.mxu0 }
  0xf3   :  { %v1195_v11 = vpop.eup %1194  ;;  %1142 = vmatprep.mubr.f32.mxu1 %v1193_v9  ;;  %1208 = vtanh.f32 %v1076_v10 }
  0xf4   :  { %v171_v12 = vpop.f32.mrf.mxu0  ;;  %1143 = vmatmul.mubr.f32.vlgmr.msra.gmra.mxu1 %v1195_v11 }
  0xf5   :  { %1210 = vtanh.f32 %v171_v12 }
  0xf6   :  { %v1197_v13 = vpop.eup %1196  ;;  %v1079_v14 = vpop.f32.mrf.mxu0 }
  0xf7   :  { %v1199_v15 = vpop.eup %1198  ;;  %1145 = vmatprep.mubr.f32.mxu1 %v1197_v13  ;;  %1212 = vtanh.f32 %v1079_v14 }
  0xf8   :  { %v181_v16 = vpop.f32.mrf.mxu0  ;;  %1146 = vmatmul.mubr.f32.gmra.mxu1 %v1199_v15  ;;  %v1201_v17 = vpop.eup %1200 }
  0xf9   :  { %1214 = vtanh.f32 %v181_v16 }
  0xfa   :  { %v1203_v18 = vpop.eup %1202  ;;  %v1082_v19 = vpop.f32.mrf.mxu0 }
  0xfb   :  { %1148 = vmatprep.mubr.f32.mxu1 %v1203_v18  ;;  %1216 = vtanh.f32 %v1082_v19 }
  0xfc   :  { %v191_v20 = vpop.f32.mrf.mxu0  ;;  %1149 = vmatmul.mubr.f32.gmra.mxu1 %v1201_v17  ;;  %v1205_v21 = vpop.eup %1204 }
  0xfd   :  { %1218 = vtanh.f32 %v191_v20 }
  0xfe   :  { %v1207_v22 = vpop.eup %1206  ;;  %v1085_v23 = vpop.f32.mrf.mxu0 }
  0xff   :  { %1151 = vmatprep.mubr.f32.mxu1 %v1207_v22  ;;  %1220 = vtanh.f32 %v1085_v23 }
 0x100   :  { %v201_v55 = vpop.f32.mrf.mxu0  ;;  %1152 = vmatmul.mubr.f32.gmra.mxu1 %v1205_v21  ;;  %v1209_v56 = vpop.eup %1208 }
 0x101   :  { %1222 = vtanh.f32 %v201_v55 }
 0x102   :  { %v1211_v57 = vpop.eup %1210  ;;  %v1088_v58 = vpop.f32.mrf.mxu0 }
 0x103   :  { %1154 = vmatprep.mubr.f32.mxu1 %v1211_v57  ;;  %1224 = vtanh.f32 %v1088_v58 }
 0x104   :  { %v211_v59 = vpop.f32.mrf.mxu0  ;;  %1155 = vmatmul.mubr.f32.gmra.mxu1 %v1209_v56  ;;  %v1213_v60 = vpop.eup %1212 }
 0x105   :  { %1226 = vtanh.f32 %v211_v59 }
 0x106   :  { %v1215_v61 = vpop.eup %1214  ;;  %v1091_v62 = vpop.f32.mrf.mxu0 }
 0x107   :  { %1157 = vmatprep.mubr.f32.mxu1 %v1215_v61  ;;  %1228 = vtanh.f32 %v1091_v62 }
 0x108   :  { %v221_v63 = vpop.f32.mrf.mxu0  ;;  %1158 = vmatmul.mubr.f32.gmra.mxu1 %v1213_v60  ;;  %v1217_v0 = vpop.eup %1216 }
 0x109   :  { %1230 = vtanh.f32 %v221_v63 }
 0x10a   :  { %v1219_v1 = vpop.eup %1218  ;;  %v1094_v2 = vpop.f32.mrf.mxu0 }
 0x10b   :  { %1160 = vmatprep.mubr.f32.mxu1 %v1219_v1  ;;  %1232 = vtanh.f32 %v1094_v2 }
 0x10c   :  { %v231_v3 = vpop.f32.mrf.mxu0  ;;  %1161 = vmatmul.mubr.f32.gmra.mxu1 %v1217_v0  ;;  %v1221_v5 = vpop.eup %1220  ;;  %v570_v0 = vlaneseq }
 0x10d   :  { %1234 = vtanh.f32 %v231_v3  ;;  %v1644_v3 = vld [vmem:[%s2320_s3] ss:$0 sm:$0xff]  ;;  %s1257_s3 = smov 3  }
 0x10e   :  { %v1223_v6 = vpop.eup %1222  ;;  %v1097_v7 = vpop.f32.mrf.mxu0  ;;  %v1631_v1 = vand.u32 127, %v570_v0 }
 0x10f   :  { %1163 = vmatprep.mubr.f32.mxu1 %v1223_v6  ;;  %1236 = vtanh.f32 %v1097_v7 }
 0x110   :  { %v241_v8 = vpop.f32.mrf.mxu0  ;;  %1164 = vmatmul.mubr.f32.gmra.mxu1 %v1221_v5  ;;  %v1225_v9 = vpop.eup %1224  ;;  %vm572_vm0 = vcmp.ge.s32.totalorder %v1631_v1, 2  ;;  %vm573_vm1 = vcmp.lt.s32.totalorder %v1631_v1, 5  ;;  %vm767_vm3 = vcmp.lt.s32.totalorder %v1631_v1, 2 }
 0x111   :  { %1238 = vtanh.f32 %v241_v8  ;;  %vm1637_vm2 = vmand %vm572_vm0, %vm573_vm1 }
 0x112   :  { %v1227_v10 = vpop.eup %1226  ;;  %v1100_v11 = vpop.f32.mrf.mxu0  ;;  %v576_v5 = vsel %vm1637_vm2, %v1361_v24, 1.0 }
 0x113   :  { %1166 = vmatprep.mubr.f32.mxu1 %v1227_v10  ;;  %1240 = vtanh.f32 %v1100_v11  ;;  %v575_v11 = vsel %vm1637_vm2, %v1298_v4, 1.0  ;;  %v577_v4 = vsel %vm1637_vm2, %v1366_v25, 1.0  ;;  %v580_v25 = vsel %vm1637_vm2, %v1385_v28, 1.0 }
 0x114   :  { %v251_v12 = vpop.f32.mrf.mxu0  ;;  %1167 = vmatmul.mubr.f32.gmra.mxu1 %v1225_v9  ;;  %v1229_v13 = vpop.eup %1228 }
 0x115   :  { %1242 = vtanh.f32 %v251_v12  ;;  %v578_v12 = vsel %vm1637_vm2, %v1373_v26, 1.0 }
 0x116   :  { %v1231_v14 = vpop.eup %1230  ;;  %v1103_v15 = vpop.f32.mrf.mxu0 }
 0x117   :  { %1169 = vmatprep.mubr.f32.mxu1 %v1231_v14  ;;  %1244 = vtanh.f32 %v1103_v15 }
 0x118   :  { %v261_v16 = vpop.f32.mrf.mxu0  ;;  %1170 = vmatmul.mubr.f32.gmra.mxu1 %v1229_v13  ;;  %v1233_v17 = vpop.eup %1232 }
 0x119   :  { %1246 = vtanh.f32 %v261_v16 }
 0x11a   :  { %v1235_v18 = vpop.eup %1234  ;;  %v1106_v19 = vpop.f32.mrf.mxu0 }
 0x11b   :  { %1172 = vmatprep.mubr.f32.mxu1 %v1235_v18  ;;  %1248 = vtanh.f32 %v1106_v19  ;;  %v579_v18 = vsel %vm1637_vm2, %v1378_v27, 1.0  ;;  %v581_v27 = vsel %vm1637_vm2, %v1390_v29, 1.0 }
 0x11c   :  { %v271_v20 = vpop.f32.mrf.mxu0  ;;  %1173 = vmatmul.mubr.f32.gmra.mxu1 %v1233_v17  ;;  %v1237_v21 = vpop.eup %1236 }
 0x11d   :  { %1250 = vtanh.f32 %v271_v20 }
 0x11e   :  { %v1239_v22 = vpop.eup %1238  ;;  %v1109_v23 = vpop.f32.mrf.mxu0 }
 0x11f   :  { %1175 = vmatprep.mubr.f32.mxu1 %v1239_v22  ;;  %1252 = vtanh.f32 %v1109_v23 }
 0x120   :  { %v281_v55 = vpop.f32.mrf.mxu0  ;;  %1176 = vmatmul.mubr.f32.gmra.mxu1 %v1237_v21  ;;  %v1241_v56 = vpop.eup %1240 }
 0x121   :  { %1254 = vtanh.f32 %v281_v55 }
 0x122   :  { %v1243_v57 = vpop.eup %1242 }
 0x123   :  { %1178 = vmatprep.mubr.f32.mxu1 %v1243_v57 }
 0x124   :  { %1179 = vmatmul.mubr.f32.gmra.mxu1 %v1241_v56  ;;  %v1245_v58 = vpop.eup %1244 }
 0x126   :  { %v1247_v59 = vpop.eup %1246 }
 0x127   :  { %1181 = vmatprep.mubr.f32.mxu1 %v1247_v59  ;;  %v582_v59 = vsel %vm1637_vm2, %v1397_v30, 1.0 }
 0x128   :  { %1182 = vmatmul.mubr.f32.gmra.mxu1 %v1245_v58  ;;  %v1249_v60 = vpop.eup %1248 }
 0x12a   :  { %v1251_v61 = vpop.eup %1250 }
 0x12b   :  { %1184 = vmatprep.mubr.f32.mxu1 %v1251_v61  ;;  %v583_v61 = vsel %vm1637_vm2, %v1402_v31, 1.0 }
 0x12c   :  { %1185 = vmatmul.mubr.f32.gmra.mxu1 %v1249_v60  ;;  %v1253_v62 = vpop.eup %1252 }
 0x12e   :  { %v1255_v63 = vpop.eup %1254 }
 0x12f   :  { %1187 = vmatprep.mubr.f32.mxu1 %v1255_v63 }
 0x130   :  { %1188 = vmatmul.mubr.f32.gmra.mxu1 %v1253_v62 }
 0x1b4   :  { %v1144_v6 = vpop.f32.mrf.mxu1 }
 0x1b5   :  { %v1650_v7 = vadd.f32 %v1144_v6, %v1644_v3 }
 0x1b6   :  { %v411_v8 = vpop.f32.mrf.mxu1 }
 0x1b7   :  { %v1653_v9 = vadd.f32 %v1644_v3, %v411_v8  ;;  %v608_v10 = vmul.f32 %v576_v5, %v1650_v7  ;;  %v584_v5 = vsel %vm1637_vm2, %v1409_v32, 1.0  ;;  %v585_v8 = vsel %vm1637_vm2, %v1414_v33, 1.0 }
 0x1b8   :  { %v1147_v13 = vpop.f32.mrf.mxu1 }
 0x1b9   :  { %v1663_v24 = vadd.f32 %v1147_v13, %v1644_v3  ;;  %641 = vrot.lane.b32.xlu0 %v608_v10, %s1257_s3  ;;  %v607_v16 = vmul.f32 %v575_v11, %v1653_v9  ;;  %v586_v13 = vsel %vm1637_vm2, %v1421_v34, 1.0 }
 0x1ba   :  { %v421_v14 = vpop.f32.mrf.mxu1 }
 0x1bb   :  { %v1667_v15 = vadd.f32 %v1644_v3, %v421_v14  ;;  %v610_v17 = vmul.f32 %v578_v12, %v1663_v24 }
 0x1bc   :  { %v1150_v26 = vpop.f32.mrf.mxu1 }
 0x1bd   :  { %639 = vrot.lane.b32.xlu0 %v607_v16, %s1257_s3  ;;  %645 = vrot.lane.b32.xlu1 %v610_v17, %s1257_s3  ;;  %v1680_v20 = vadd.f32 %v1150_v26, %v1644_v3  ;;  %v609_v22 = vmul.f32 %v577_v4, %v1667_v15  ;;  %v587_v16 = vsel %vm1637_vm2, %v1426_v35, 1.0 }
 0x1be   :  { %v431_v19 = vpop.f32.mrf.mxu1 }
 0x1bf   :  { %v1683_v21 = vadd.f32 %v1644_v3, %v431_v19  ;;  %v612_v28 = vmul.f32 %v580_v25, %v1680_v20 }
 0x1c0   :  { %v1153_v23 = vpop.f32.mrf.mxu1 }
 0x1c1   :  { %643 = vrot.lane.b32.xlu1 %v609_v22, %s1257_s3  ;;  %v611_v55 = vmul.f32 %v579_v18, %v1683_v21  ;;  %v1695_v57 = vadd.f32 %v1153_v23, %v1644_v3  ;;  %v588_v18 = vsel %vm1637_vm2, %v1433_v36, 1.0  ;;  %v589_v22 = vsel %vm1637_vm2, %v1438_v37, 1.0  ;;  %v1758_v23 = vpop.permute.xlu0 %703 }
 0x1c2   :  { %v441_v56 = vpop.f32.mrf.mxu1 }
 0x1c3   :  { %v1698_v58 = vadd.f32 %v1644_v3, %v441_v56  ;;  %647 = vrot.lane.b32.xlu0 %v611_v55, %s1257_s3  ;;  %v614_v30 = vmul.f32 %v582_v59, %v1695_v57  ;;  %v590_v56 = vsel %vm1637_vm2, %v1445_v38, 1.0  ;;  %v591_v59 = vsel %vm1637_vm2, %v1450_v39, 1.0 }
 0x1c4   :  { %v1156_v60 = vpop.f32.mrf.mxu1 }
 0x1c5   :  { %649 = vrot.lane.b32.xlu1 %v612_v28, %s1257_s3  ;;  %v613_v29 = vmul.f32 %v581_v27, %v1698_v58  ;;  %v1711_v63 = vadd.f32 %v1156_v60, %v1644_v3 }
 0x1c6   :  { %v451_v62 = vpop.f32.mrf.mxu1 }
 0x1c7   :  { %v1714_v0 = vadd.f32 %v1644_v3, %v451_v62  ;;  %651 = vrot.lane.b32.xlu0 %v613_v29, %s1257_s3  ;;  %v616_v32 = vmul.f32 %v584_v5, %v1711_v63  ;;  %v1776_v29 = vpop.permute.xlu1 %705 }
 0x1c8   :  { %v1159_v6 = vpop.f32.mrf.mxu1 }
 0x1c9   :  { %653 = vrot.lane.b32.xlu1 %v614_v30, %s1257_s3  ;;  %v615_v31 = vmul.f32 %v583_v61, %v1714_v0  ;;  %v1727_v11 = vadd.f32 %v1159_v6, %v1644_v3  ;;  %v592_v30 = vsel %vm1637_vm2, %v1457_v40, 1.0  ;;  %v1789_v6 = vpop.permute.xlu0 %707 }
 0x1ca   :  { %v461_v10 = vpop.f32.mrf.mxu1 }
 0x1cb   :  { %v1730_v12 = vadd.f32 %v1644_v3, %v461_v10  ;;  %655 = vrot.lane.b32.xlu0 %v615_v31, %s1257_s3  ;;  %v618_v34 = vmul.f32 %v586_v13, %v1727_v11  ;;  %v593_v31 = vsel %vm1637_vm2, %v1462_v41, 1.0  ;;  %v594_v13 = vsel %vm1637_vm2, %v1469_v42, 1.0 }
 0x1cc   :  { %v1162_v14 = vpop.f32.mrf.mxu1 }
 0x1cd   :  { %657 = vrot.lane.b32.xlu1 %v616_v32, %s1257_s3  ;;  %v617_v33 = vmul.f32 %v585_v8, %v1730_v12  ;;  %v1743_v4 = vadd.f32 %v1162_v14, %v1644_v3 }
 0x1ce   :  { %v471_v17 = vpop.f32.mrf.mxu1 }
 0x1cf   :  { %v1746_v26 = vadd.f32 %v1644_v3, %v471_v17  ;;  %659 = vrot.lane.b32.xlu0 %v617_v33, %s1257_s3  ;;  %v620_v36 = vmul.f32 %v588_v18, %v1743_v4  ;;  %v1807_v33 = vpop.permute.xlu1 %709 }
 0x1d0   :  { %v1165_v19 = vpop.f32.mrf.mxu1 }
 0x1d1   :  { %661 = vrot.lane.b32.xlu1 %v618_v34, %s1257_s3  ;;  %v619_v35 = vmul.f32 %v587_v16, %v1746_v26  ;;  %v1761_v55 = vadd.f32 %v1165_v19, %v1644_v3  ;;  %v595_v16 = vsel %vm1637_vm2, %v1474_v43, 1.0  ;;  %v1814_v34 = vpop.permute.xlu0 %711 }
 0x1d2   :  { %v481_v25 = vpop.f32.mrf.mxu1 }
 0x1d3   :  { %v1764_v27 = vadd.f32 %v1644_v3, %v481_v25  ;;  %663 = vrot.lane.b32.xlu0 %v619_v35, %s1257_s3  ;;  %v622_v38 = vmul.f32 %v590_v56, %v1761_v55  ;;  %v596_v35 = vsel %vm1637_vm2, %v1481_v44, 1.0  ;;  %v597_v25 = vsel %vm1637_vm2, %v1486_v45, 1.0  ;;  %v1832_v56 = vpop.permute.xlu1 %713 }
 0x1d4   :  { %v1168_v28 = vpop.f32.mrf.mxu1 }
 0x1d5   :  { %665 = vrot.lane.b32.xlu1 %v620_v36, %s1257_s3  ;;  %v621_v37 = vmul.f32 %v589_v22, %v1764_v27  ;;  %v1779_v61 = vadd.f32 %v1168_v28, %v1644_v3 }
 0x1d6   :  { %v491_v60 = vpop.f32.mrf.mxu1 }
 0x1d7   :  { %v1782_v62 = vadd.f32 %v1644_v3, %v491_v60  ;;  %667 = vrot.lane.b32.xlu0 %v621_v37, %s1257_s3  ;;  %v624_v40 = vmul.f32 %v592_v30, %v1779_v61  ;;  %v599_v30 = vsel %vm1637_vm2, %v1498_v47, 1.0 }
 0x1d8   :  { %v1171_v5 = vpop.f32.mrf.mxu1 }
 0x1d9   :  { %669 = vrot.lane.b32.xlu1 %v622_v38, %s1257_s3  ;;  %v623_v39 = vmul.f32 %v591_v59, %v1782_v62  ;;  %v1797_v10 = vadd.f32 %v1171_v5, %v1644_v3  ;;  %v598_v59 = vsel %vm1637_vm2, %v1493_v46, 1.0  ;;  %v1845_v38 = vpop.permute.xlu0 %715 }
 0x1da   :  { %v501_v8 = vpop.f32.mrf.mxu1 }
 0x1db   :  { %v1800_v32 = vadd.f32 %v1644_v3, %v501_v8  ;;  %671 = vrot.lane.b32.xlu0 %v623_v39, %s1257_s3  ;;  %v626_v42 = vmul.f32 %v594_v13, %v1797_v10  ;;  %v600_v8 = vsel %vm1637_vm2, %v1505_v48, 1.0  ;;  %v1863_v13 = vpop.permute.xlu1 %717 }
 0x1dc   :  { %v1174_v14 = vpop.f32.mrf.mxu1 }
 0x1dd   :  { %673 = vrot.lane.b32.xlu1 %v624_v40, %s1257_s3  ;;  %v625_v41 = vmul.f32 %v593_v31, %v1800_v32  ;;  %v1817_v18 = vadd.f32 %v1174_v14, %v1644_v3  ;;  %v601_v14 = vsel %vm1637_vm2, %v1510_v49, 1.0 }
 0x1de   :  { %v511_v17 = vpop.f32.mrf.mxu1 }
 0x1df   :  { %v1820_v19 = vadd.f32 %v1644_v3, %v511_v17  ;;  %675 = vrot.lane.b32.xlu0 %v625_v41, %s1257_s3  ;;  %v628_v44 = vmul.f32 %v596_v35, %v1817_v18  ;;  %v602_v35 = vsel %vm1637_vm2, %v1517_v50, 1.0 }
 0x1e0   :  { %v1177_v22 = vpop.f32.mrf.mxu1 }
 0x1e1   :  { %677 = vrot.lane.b32.xlu1 %v626_v42, %s1257_s3  ;;  %v627_v43 = vmul.f32 %v595_v16, %v1820_v19  ;;  %v1835_v28 = vadd.f32 %v1177_v22, %v1644_v3  ;;  %v1870_v16 = vpop.permute.xlu0 %719 }
 0x1e2   :  { %v521_v36 = vpop.f32.mrf.mxu1 }
 0x1e3   :  { %v1838_v37 = vadd.f32 %v1644_v3, %v521_v36  ;;  %679 = vrot.lane.b32.xlu0 %v627_v43, %s1257_s3  ;;  %v630_v46 = vmul.f32 %v598_v59, %v1835_v28  ;;  %v603_v43 = vsel %vm1637_vm2, %v1522_v51, 1.0  ;;  %v1888_v36 = vpop.permute.xlu1 %721 }
 0x1e4   :  { %v1180_v60 = vpop.f32.mrf.mxu1 }
 0x1e5   :  { %681 = vrot.lane.b32.xlu1 %v628_v44, %s1257_s3  ;;  %v629_v45 = vmul.f32 %v597_v25, %v1838_v37  ;;  %v1853_v39 = vadd.f32 %v1180_v60, %v1644_v3  ;;  %v604_v60 = vsel %vm1637_vm2, %v1529_v52, 1.0 }
 0x1e6   :  { %v531_v5 = vpop.f32.mrf.mxu1 }
 0x1e7   :  { %v1856_v31 = vadd.f32 %v1644_v3, %v531_v5  ;;  %683 = vrot.lane.b32.xlu0 %v629_v45, %s1257_s3  ;;  %v632_v48 = vmul.f32 %v600_v8, %v1853_v39  ;;  %v605_v5 = vsel %vm1637_vm2, %v1534_v53, 1.0 }
 0x1e8   :  { %v1183_v40 = vpop.f32.mrf.mxu1 }
 0x1e9   :  { %685 = vrot.lane.b32.xlu1 %v630_v46, %s1257_s3  ;;  %v631_v47 = vmul.f32 %v599_v30, %v1856_v31  ;;  %v1873_v17 = vadd.f32 %v1183_v40, %v1644_v3  ;;  %v1901_v30 = vpop.permute.xlu0 %723 }
 0x1ea   :  { %v541_v41 = vpop.f32.mrf.mxu1 }
 0x1eb   :  { %2336 = vst [vmem:[#allocation2_spill] sm:$0xff] %v1873_v17  ;;  %v1876_v42 = vadd.f32 %v1644_v3, %v541_v41  ;;  %687 = vrot.lane.b32.xlu0 %v631_v47, %s1257_s3  ;;  %v634_v50 = vmul.f32 %v602_v35, %v1873_v17  ;;  %v606_v47 = vsel %vm1637_vm2, %v1541_v54, 1.0 }
 0x1ec   :  { %v1186_v22 = vpop.f32.mrf.mxu1 }
 0x1ed   :  { %2337 = vst [vmem:[#allocation3_spill] sm:$0xff] %v1876_v42  ;;  %689 = vrot.lane.b32.xlu1 %v632_v48, %s1257_s3  ;;  %v633_v49 = vmul.f32 %v601_v14, %v1876_v42  ;;  %v1891_v44 = vadd.f32 %v1186_v22, %v1644_v3  ;;  %v1919_v14 = vpop.permute.xlu1 %725  ;;  %v1923_v48 = vpop.permute.xlu0 %727  ;;  %v772_v42 = vsub.f32 0.0, %v1814_v34 }
 0x1ee   :  { %v551_v25 = vpop.f32.mrf.mxu1 }
 0x1ef   :  { %2338 = vst [vmem:[#allocation4_spill] sm:$0xff] %v1891_v44  ;;  %v1894_v59 = vadd.f32 %v1644_v3, %v551_v25  ;;  %691 = vrot.lane.b32.xlu0 %v633_v49, %s1257_s3  ;;  %v636_v52 = vmul.f32 %v604_v60, %v1891_v44 }
 0x1f0   :  { %v1189_v45 = vpop.f32.mrf.mxu1 }
 0x1f1   :  { %2339 = vst [vmem:[#allocation5_spill] sm:$0xff] %v1894_v59  ;;  %693 = vrot.lane.b32.xlu1 %v634_v50, %s1257_s3  ;;  %v635_v51 = vmul.f32 %v603_v43, %v1894_v59  ;;  %v1909_v8 = vadd.f32 %v1189_v45, %v1644_v3  ;;  %v1928_v35 = vpop.permute.xlu1 %729  ;;  %v1932_v2 = vpop.permute.xlu0 %731 }
 0x1f2   :  { %v561_v46 = vpop.f32.mrf.mxu1 }
 0x1f3   :  { %2340 = vst [vmem:[#allocation6_spill] sm:$0xff] %v1909_v8  ;;  %v1912_v40 = vadd.f32 %v1644_v3, %v561_v46  ;;  %695 = vrot.lane.b32.xlu0 %v635_v51, %s1257_s3  ;;  %v638_v3 = vmul.f32 %v606_v47, %v1909_v8  ;;  %v769_v47 = vsub.f32 0.0, %v1776_v29  ;;  %v768_v8 = vsub.f32 0.0, %v1758_v23 }
 0x1f4   :  { %v770_v23 = vsub.f32 0.0, %v1789_v6 }
 0x1f5   :  { %2341 = vst [vmem:[#allocation7_spill] sm:$0xff] %v1912_v40  ;;  %697 = vrot.lane.b32.xlu1 %v636_v52, %s1257_s3  ;;  %v637_v41 = vmul.f32 %v605_v5, %v1912_v40  ;;  %v1936_v22 = vpop.permute.xlu1 %733  ;;  %v1938_v49 = vpop.permute.xlu0 %735  ;;  %v771_v40 = vsub.f32 0.0, %v1807_v33 }
 0x1f7   :  { %699 = vrot.lane.b32.xlu0 %v637_v41, %s1257_s3 }
 0x1f9   :  { %701 = vrot.lane.b32.xlu1 %v638_v3, %s1257_s3  ;;  %v1940_v43 = vpop.permute.xlu1 %737  ;;  %v1942_v25 = vpop.permute.xlu0 %739  ;;  %v801_v3 = vmul.f32 %v769_v47, %v1650_v7  ;;  %v803_v47 = vmul.f32 %v771_v40, %v1663_v24  ;;  %v773_v40 = vsub.f32 0.0, %v1832_v56 }
 0x1fb   :  { %763 = vrot.lane.b32.xlu0 %v1534_v53, %s1256_s9 }
 0x1fd   :  { %765 = vrot.lane.b32.xlu1 %v1541_v54, %s1256_s9  ;;  %v1944_v50 = vpop.permute.xlu1 %741  ;;  %v1946_v60 = vpop.permute.xlu0 %743 }
 0x201   :  { %v1948_v45 = vpop.permute.xlu1 %745  ;;  %v1950_v53 = vpop.permute.xlu0 %747 }
 0x205   :  { %v1952_v51 = vpop.permute.xlu1 %749  ;;  %v1954_v5 = vpop.permute.xlu0 %751 }
 0x209   :  { %v1956_v54 = vpop.permute.xlu1 %753  ;;  %v1958_v46 = vpop.permute.xlu0 %755 }
 0x20d   :  { %v1960_v52 = vpop.permute.xlu1 %757  ;;  %v1963_v41 = vpop.permute.xlu0 %759 }
 0x20e   :  { %2342 = vst [vmem:[#allocation8_spill] sm:$0xff] %v1963_v41  ;;  %v800_v41 = vmul.f32 %v768_v8, %v1653_v9  ;;  %v802_v8 = vmul.f32 %v770_v23, %v1667_v15  ;;  %v776_v23 = vsub.f32 0.0, %v1870_v16 }
 0x211   :  { %v1969_v44 = vpop.permute.xlu1 %761 }
 0x212   :  { %2343 = vst [vmem:[#allocation9_spill] sm:$0xff] %v1969_v44 }
 0x22b   :  { %v642_v59 = vpop.permute.xlu0 %641 }
 0x22c   :  { %v833_v17 = vsel %vm573_vm1, %v801_v3, %v642_v59  ;;  %v805_v3 = vmul.f32 %v773_v40, %v1680_v20 }
 0x22d   :  { %v865_v29 = vsel %vm767_vm3, %v1650_v7, %v833_v17 }
 0x22e   :  { %898 = vst.msk [vmem:[%s2321_s4 + $0x8] sm:$0xff] %vm896_vm4, %v865_v29  ;;  %v775_v29 = vsub.f32 0.0, %v1863_v13 }
 0x22f   :  { %v640_v33 = vpop.permute.xlu0 %639  ;;  %v646_v44 = vpop.permute.xlu1 %645 }
 0x230   :  { %v832_v59 = vsel %vm573_vm1, %v800_v41, %v640_v33  ;;  %v835_v7 = vsel %vm573_vm1, %v803_v47, %v646_v44  ;;  %v774_v44 = vsub.f32 0.0, %v1845_v38 }
 0x231   :  { %v864_v17 = vsel %vm767_vm3, %v1653_v9, %v832_v59  ;;  %v867_v6 = vsel %vm767_vm3, %v1663_v24, %v835_v7  ;;  %v804_v9 = vmul.f32 %v772_v42, %v1683_v21  ;;  %v777_v7 = vsub.f32 0.0, %v1888_v36 }
 0x232   :  { %897 = vst.msk [vmem:[%s2321_s4] sm:$0xff] %vm896_vm4, %v864_v17  ;;  %900 = vst.msk [vmem:[%s2321_s4 + $0x18] sm:$0xff] %vm896_vm4, %v867_v6 }
 0x233   :  { %v644_v34 = vpop.permute.xlu1 %643 }
 0x234   :  { %v834_v24 = vsel %vm573_vm1, %v802_v8, %v644_v34  ;;  %v778_v8 = vsub.f32 0.0, %v1901_v30 }
 0x235   :  { %v866_v56 = vsel %vm767_vm3, %v1667_v15, %v834_v24  ;;  %v648_v41 = vpop.permute.xlu0 %647  ;;  %v806_v15 = vmul.f32 %v774_v44, %v1698_v58 }
 0x236   :  { %899 = vst.msk [vmem:[%s2321_s4 + $0x10] sm:$0xff] %vm896_vm4, %v866_v56  ;;  %v836_v38 = vsel %vm573_vm1, %v804_v9, %v648_v41  ;;  %v779_v9 = vsub.f32 0.0, %v1919_v14  ;;  %v780_v56 = vsub.f32 0.0, %v1923_v48 }
 0x237   :  { %v868_v42 = vsel %vm767_vm3, %v1683_v21, %v836_v38  ;;  %v650_v47 = vpop.permute.xlu1 %649  ;;  %v807_v21 = vmul.f32 %v775_v29, %v1695_v57  ;;  %v781_v29 = vsub.f32 0.0, %v1928_v35 }
 0x238   :  { %901 = vst.msk [vmem:[%s2321_s4 + $0x20] sm:$0xff] %vm896_vm4, %v868_v42  ;;  %v837_v13 = vsel %vm573_vm1, %v805_v3, %v650_v47  ;;  %v782_v47 = vsub.f32 0.0, %v1932_v2 }
 0x239   :  { %v869_v33 = vsel %vm767_vm3, %v1680_v20, %v837_v13  ;;  %v652_v59 = vpop.permute.xlu0 %651  ;;  %v808_v20 = vmul.f32 %v776_v23, %v1714_v0  ;;  %v783_v13 = vsub.f32 0.0, %v1936_v22 }
 0x23a   :  { %902 = vst.msk [vmem:[%s2321_s4 + $0x28] sm:$0xff] %vm896_vm4, %v869_v33  ;;  %v838_v16 = vsel %vm573_vm1, %v806_v15, %v652_v59 }
 0x23b   :  { %v870_v17 = vsel %vm767_vm3, %v1698_v58, %v838_v16  ;;  %v654_v6 = vpop.permute.xlu1 %653  ;;  %v809_v58 = vmul.f32 %v777_v7, %v1711_v63 }
 0x23c   :  { %903 = vst.msk [vmem:[%s2321_s4 + $0x30] sm:$0xff] %vm896_vm4, %v870_v17  ;;  %v839_v36 = vsel %vm573_vm1, %v807_v21, %v654_v6  ;;  %v784_v21 = vsub.f32 0.0, %v1938_v49  ;;  %v785_v17 = vsub.f32 0.0, %v1940_v43 }
 0x23d   :  { %v871_v40 = vsel %vm767_vm3, %v1695_v57, %v839_v36  ;;  %v656_v34 = vpop.permute.xlu0 %655  ;;  %v810_v57 = vmul.f32 %v778_v8, %v1730_v12  ;;  %v786_v8 = vsub.f32 0.0, %v1942_v25 }
 0x23e   :  { %904 = vst.msk [vmem:[%s2321_s4 + $0x38] sm:$0xff] %vm896_vm4, %v871_v40  ;;  %v840_v30 = vsel %vm573_vm1, %v808_v20, %v656_v34  ;;  %v787_v34 = vsub.f32 0.0, %v1944_v50 }
 0x23f   :  { %v872_v44 = vsel %vm767_vm3, %v1714_v0, %v840_v30  ;;  %v658_v24 = vpop.permute.xlu1 %657  ;;  %v811_v0 = vmul.f32 %v779_v9, %v1727_v11  ;;  %v788_v30 = vsub.f32 0.0, %v1946_v60 }
 0x240   :  { %905 = vst.msk [vmem:[%s2321_s4 + $0x40] sm:$0xff] %vm896_vm4, %v872_v44  ;;  %v841_v14 = vsel %vm573_vm1, %v809_v58, %v658_v24 }
 0x241   :  { %v873_v41 = vsel %vm767_vm3, %v1711_v63, %v841_v14  ;;  %v660_v3 = vpop.permute.xlu0 %659  ;;  %v812_v63 = vmul.f32 %v780_v56, %v1746_v26 }
 0x242   :  { %906 = vst.msk [vmem:[%s2321_s4 + $0x48] sm:$0xff] %vm896_vm4, %v873_v41  ;;  %v842_v48 = vsel %vm573_vm1, %v810_v57, %v660_v3  ;;  %v789_v57 = vsub.f32 0.0, %v1948_v45  ;;  %v790_v41 = vsub.f32 0.0, %v1950_v53 }
 0x243   :  { %v874_v38 = vsel %vm767_vm3, %v1730_v12, %v842_v48  ;;  %v662_v42 = vpop.permute.xlu1 %661  ;;  %v813_v12 = vmul.f32 %v781_v29, %v1743_v4  ;;  %v791_v29 = vsub.f32 0.0, %v1952_v51 }
 0x244   :  { %907 = vst.msk [vmem:[%s2321_s4 + $0x50] sm:$0xff] %vm896_vm4, %v874_v38  ;;  %v843_v35 = vsel %vm573_vm1, %v811_v0, %v662_v42  ;;  %v792_v42 = vsub.f32 0.0, %v1954_v5 }
 0x245   :  { %v875_v15 = vsel %vm767_vm3, %v1727_v11, %v843_v35  ;;  %v664_v23 = vpop.permute.xlu0 %663  ;;  %v814_v11 = vmul.f32 %v782_v47, %v1764_v27  ;;  %v793_v35 = vsub.f32 0.0, %v1956_v54 }
 0x246   :  { %908 = vst.msk [vmem:[%s2321_s4 + $0x58] sm:$0xff] %vm896_vm4, %v875_v15  ;;  %v844_v2 = vsel %vm573_vm1, %v812_v63, %v664_v23 }
 0x247   :  { %v876_v33 = vsel %vm767_vm3, %v1746_v26, %v844_v2  ;;  %v666_v59 = vpop.permute.xlu1 %665  ;;  %v815_v26 = vmul.f32 %v783_v13, %v1761_v55 }
 0x248   :  { %909 = vst.msk [vmem:[%s2321_s4 + $0x60] sm:$0xff] %vm896_vm4, %v876_v33  ;;  %v845_v22 = vsel %vm573_vm1, %v813_v12, %v666_v59  ;;  %v794_v12 = vsub.f32 0.0, %v1958_v46  ;;  %v795_v33 = vsub.f32 0.0, %v1960_v52 }
 0x249   :  { %v877_v7 = vsel %vm767_vm3, %v1743_v4, %v845_v22  ;;  %v668_v16 = vpop.permute.xlu0 %667  ;;  %v816_v4 = vmul.f32 %v784_v21, %v1782_v62  ;;  %v2344_v21 = vld [vmem:[#allocation3_spill] sm:$0xff]  ;;  %v2345_v22 = vld [vmem:[#allocation8_spill] sm:$0xff] }
 0x24a   :  { %910 = vst.msk [vmem:[%s2321_s4 + $0x68] sm:$0xff] %vm896_vm4, %v877_v7  ;;  %v846_v49 = vsel %vm573_vm1, %v814_v11, %v668_v16  ;;  %v796_v7 = vsub.f32 0.0, %v2345_v22 }
 0x24b   :  { %v878_v6 = vsel %vm767_vm3, %v1764_v27, %v846_v49  ;;  %v670_v20 = vpop.permute.xlu1 %669  ;;  %v817_v27 = vmul.f32 %v785_v17, %v1779_v61  ;;  %v2346_v17 = vld [vmem:[#allocation2_spill] sm:$0xff]  ;;  %v2347_v49 = vld [vmem:[#allocation9_spill] sm:$0xff] }
 0x24c   :  { %911 = vst.msk [vmem:[%s2321_s4 + $0x70] sm:$0xff] %vm896_vm4, %v878_v6  ;;  %v847_v43 = vsel %vm573_vm1, %v815_v26, %v670_v20  ;;  %v797_v6 = vsub.f32 0.0, %v2347_v49 }
 0x24d   :  { %v879_v36 = vsel %vm767_vm3, %v1761_v55, %v847_v43  ;;  %v672_v40 = vpop.permute.xlu0 %671  ;;  %v818_v55 = vmul.f32 %v786_v8, %v1800_v32  ;;  %v2348_v43 = vld [vmem:[#allocation5_spill] sm:$0xff] }
 0x24e   :  { %912 = vst.msk [vmem:[%s2321_s4 + $0x78] sm:$0xff] %vm896_vm4, %v879_v36  ;;  %v848_v25 = vsel %vm573_vm1, %v816_v4, %v672_v40 }
 0x24f   :  { %v880_v58 = vsel %vm767_vm3, %v1782_v62, %v848_v25  ;;  %v674_v9 = vpop.permute.xlu1 %673  ;;  %v819_v62 = vmul.f32 %v787_v34, %v1797_v10  ;;  %v2349_v34 = vld [vmem:[#allocation4_spill] sm:$0xff] }
 0x250   :  { %913 = vst.msk [vmem:[%s2321_s4 + $0x80] sm:$0xff] %vm896_vm4, %v880_v58  ;;  %v849_v50 = vsel %vm573_vm1, %v817_v27, %v674_v9  ;;  %v829_v25 = vmul.f32 %v797_v6, %v2349_v34 }
 0x251   :  { %v881_v44 = vsel %vm767_vm3, %v1779_v61, %v849_v50  ;;  %v676_v24 = vpop.permute.xlu0 %675  ;;  %v820_v61 = vmul.f32 %v788_v30, %v1820_v19 }
 0x252   :  { %914 = vst.msk [vmem:[%s2321_s4 + $0x88] sm:$0xff] %vm896_vm4, %v881_v44  ;;  %v850_v60 = vsel %vm573_vm1, %v818_v55, %v676_v24 }
 0x253   :  { %v882_v56 = vsel %vm767_vm3, %v1800_v32, %v850_v60  ;;  %v678_v14 = vpop.permute.xlu1 %677  ;;  %v821_v32 = vmul.f32 %v789_v57, %v1817_v18 }
 0x254   :  { %915 = vst.msk [vmem:[%s2321_s4 + $0x90] sm:$0xff] %vm896_vm4, %v882_v56  ;;  %v851_v45 = vsel %vm573_vm1, %v819_v62, %v678_v14  ;;  %v2350_v56 = vld [vmem:[#allocation7_spill] sm:$0xff] }
 0x255   :  { %v883_v3 = vsel %vm767_vm3, %v1797_v10, %v851_v45  ;;  %v680_v0 = vpop.permute.xlu0 %679  ;;  %v822_v10 = vmul.f32 %v790_v41, %v1838_v37  ;;  %v2351_v45 = vld [vmem:[#allocation6_spill] sm:$0xff] }
 0x256   :  { %916 = vst.msk [vmem:[%s2321_s4 + $0x98] sm:$0xff] %vm896_vm4, %v883_v3  ;;  %v852_v53 = vsel %vm573_vm1, %v820_v61, %v680_v0 }
 0x257   :  { %v884_v48 = vsel %vm767_vm3, %v1820_v19, %v852_v53  ;;  %v682_v38 = vpop.permute.xlu1 %681  ;;  %v823_v19 = vmul.f32 %v791_v29, %v1835_v28 }
 0x258   :  { %917 = vst.msk [vmem:[%s2321_s4 + $0xa0] sm:$0xff] %vm896_vm4, %v884_v48  ;;  %v853_v51 = vsel %vm573_vm1, %v821_v32, %v682_v38 }
 0x259   :  { %v885_v63 = vsel %vm767_vm3, %v1817_v18, %v853_v51  ;;  %v684_v47 = vpop.permute.xlu0 %683  ;;  %v824_v18 = vmul.f32 %v792_v42, %v1856_v31 }
 0x25a   :  { %918 = vst.msk [vmem:[%s2321_s4 + $0xa8] sm:$0xff] %vm896_vm4, %v885_v63  ;;  %v854_v5 = vsel %vm573_vm1, %v822_v10, %v684_v47 }
 0x25b   :  { %v886_v15 = vsel %vm767_vm3, %v1838_v37, %v854_v5  ;;  %v686_v23 = vpop.permute.xlu1 %685  ;;  %v825_v37 = vmul.f32 %v793_v35, %v1853_v39 }
 0x25c   :  { %919 = vst.msk [vmem:[%s2321_s4 + $0xb0] sm:$0xff] %vm896_vm4, %v886_v15  ;;  %v855_v54 = vsel %vm573_vm1, %v823_v19, %v686_v23 }
 0x25d   :  { %v887_v13 = vsel %vm767_vm3, %v1835_v28, %v855_v54  ;;  %v688_v2 = vpop.permute.xlu0 %687  ;;  %v826_v28 = vmul.f32 %v794_v12, %v2344_v21 }
 0x25e   :  { %920 = vst.msk [vmem:[%s2321_s4 + $0xb8] sm:$0xff] %vm896_vm4, %v887_v13  ;;  %v856_v46 = vsel %vm573_vm1, %v824_v18, %v688_v2 }
 0x25f   :  { %v888_v59 = vsel %vm767_vm3, %v1856_v31, %v856_v46  ;;  %v690_v11 = vpop.permute.xlu1 %689  ;;  %v827_v31 = vmul.f32 %v795_v33, %v2346_v17 }
 0x260   :  { %921 = vst.msk [vmem:[%s2321_s4 + $0xc0] sm:$0xff] %vm896_vm4, %v888_v59  ;;  %v857_v52 = vsel %vm573_vm1, %v825_v37, %v690_v11 }
 0x261   :  { %v889_v16 = vsel %vm767_vm3, %v1853_v39, %v857_v52  ;;  %v692_v26 = vpop.permute.xlu0 %691  ;;  %v828_v39 = vmul.f32 %v796_v7, %v2348_v43 }
 0x262   :  { %922 = vst.msk [vmem:[%s2321_s4 + $0xc8] sm:$0xff] %vm896_vm4, %v889_v16  ;;  %v858_v20 = vsel %vm573_vm1, %v826_v28, %v692_v26 }
 0x263   :  { %v890_v4 = vsel %vm767_vm3, %v2344_v21, %v858_v20  ;;  %v694_v8 = vpop.permute.xlu1 %693 }
 0x264   :  { %923 = vst.msk [vmem:[%s2321_s4 + $0xd0] sm:$0xff] %vm896_vm4, %v890_v4  ;;  %v859_v36 = vsel %vm573_vm1, %v827_v31, %v694_v8 }
 0x265   :  { %v891_v40 = vsel %vm767_vm3, %v2346_v17, %v859_v36  ;;  %v696_v27 = vpop.permute.xlu0 %695 }
 0x266   :  { %924 = vst.msk [vmem:[%s2321_s4 + $0xd8] sm:$0xff] %vm896_vm4, %v891_v40  ;;  %v860_v58 = vsel %vm573_vm1, %v828_v39, %v696_v27 }
 0x267   :  { %v892_v9 = vsel %vm767_vm3, %v2348_v43, %v860_v58  ;;  %v698_v55 = vpop.permute.xlu1 %697 }
 0x268   :  { %925 = vst.msk [vmem:[%s2321_s4 + $0xe0] sm:$0xff] %vm896_vm4, %v892_v9  ;;  %v861_v30 = vsel %vm573_vm1, %v829_v25, %v698_v55 }
 0x269   :  { %v893_v50 = vsel %vm767_vm3, %v2349_v34, %v861_v30  ;;  %v700_v44 = vpop.permute.xlu0 %699 }
 0x26a   :  { %926 = vst.msk [vmem:[%s2321_s4 + $0xe8] sm:$0xff] %vm896_vm4, %v893_v50 }
 0x26b   :  { %v702_v24 = vpop.permute.xlu1 %701 }
 0x26d   :  { %v764_v62 = vpop.permute.xlu0 %763 }
 0x26e   :  { %v798_v57 = vsub.f32 0.0, %v764_v62 }
 0x26f   :  { %v766_v60 = vpop.permute.xlu1 %765 }
 0x270   :  { %v830_v14 = vmul.f32 %v798_v57, %v2350_v56  ;;  %v799_v61 = vsub.f32 0.0, %v766_v60 }
 0x272   :  { %v862_v41 = vsel %vm573_vm1, %v830_v14, %v700_v44  ;;  %v831_v3 = vmul.f32 %v799_v61, %v2351_v45 }
 0x273   :  { %v894_v0 = vsel %vm767_vm3, %v2350_v56, %v862_v41 }
 0x274   :  { %927 = vst.msk [vmem:[%s2321_s4 + $0xf0] sm:$0xff] %vm896_vm4, %v894_v0  ;;  %v863_v32 = vsel %vm573_vm1, %v831_v3, %v702_v24 }
 0x275   :  { %v895_v29 = vsel %vm767_vm3, %v2351_v45, %v863_v32 }
 0x276   :  { %928 = vst.msk [vmem:[%s2321_s4 + $0xf8] sm:$0xff] %vm896_vm4, %v895_v29 }

</bundles_post_ra>
